<compile_context>
chip_gen: v7x
topology: tpu7x:2x2x1
jax: 0.10.0
libtpu: 0.0.40
codegen_flags: <defaults>
</compile_context>

<pallas_src>
import functools

import jax
import jax.numpy as jnp
from jax.experimental import pallas as pl
from jax.experimental.pallas import tpu as pltpu


def _bce_partial_kernel(x_ref, t_ref, o_ref, *, c1, c2, rows_last_valid, mask_last):
    """Per-tile partial sum of label-smoothed BCE-with-logits.

    c1 = 1 - eps/K, c2 = 1 - eps (compile-time constants).  Numerically stable:
        max_val + log(exp(-max_val) + exp(-x - max_val)) == max(-x,0) + log(1+exp(-|x|))
    """
    x = x_ref[...].astype(jnp.float32)
    t = t_ref[...].astype(jnp.float32)

    loss = (c1 * x - c2 * (x * t)
            + jnp.maximum(-x, 0.0)
            + jnp.log(1.0 + jnp.exp(-jnp.abs(x))))

    if mask_last:
        # Only the trailing (ragged) tile pays for the row mask.
        last = pl.num_programs(0) - 1

        @pl.when(pl.program_id(0) == last)
        def _():
            row = jax.lax.broadcasted_iota(jnp.int32, loss.shape, 0)
            o_ref[...] = jnp.sum(jnp.where(row < rows_last_valid, loss, 0.0),
                                 axis=0, keepdims=True)

        @pl.when(pl.program_id(0) != last)
        def _():
            o_ref[...] = jnp.sum(loss, axis=0, keepdims=True)
    else:
        o_ref[...] = jnp.sum(loss, axis=0, keepdims=True)


def bce_loss(inputs, targets, *, num_classes, epsilon=0.1, label_smooth=True,
             block_rows=None):
    """Pallas TPU implementation of BCELoss.forward.

    inputs:  (B, K) prediction logits (f32 or bf16)
    targets: (B, K) ground-truth labels (multi-hot / soft; any float dtype)
    returns: scalar float32 loss ( == loss.mean(0).sum() of the PyTorch module )
    """
    eps = float(epsilon) if label_smooth else 0.0
    B, K = inputs.shape
    assert targets.shape == (B, K)

    # --- Row-tile sizing (no input copies; operate on the native (B, K) layout).
    bytes_per_row = K * (jnp.dtype(inputs.dtype).itemsize
                         + jnp.dtype(targets.dtype).itemsize)
    # Both inputs x double-buffering must stay comfortably under the v5e 16 MiB
    # scoped-VMEM default (also fine for v6e 32 MiB scoped and v7x 64 MiB phys).
    budget_bytes = 12 * 1024 * 1024
    tb_cap = max(8, (budget_bytes // (2 * max(1, bytes_per_row))) // 8 * 8)
    if block_rows is not None:
        tb_cap = min(tb_cap, max(8, (int(block_rows) // 8) * 8))

    if B <= tb_cap:
        if B >= 2048:
            # Split large batches into 2 tiles so the "parallel" grid axis can
            # be sharded across both v7x TensorCores.
            tb = ((-(-B // 2)) + 7) // 8 * 8
        else:
            tb = B          # block == full dim, always a legal BlockSpec
    else:
        tb = tb_cap

    num_tiles = pl.cdiv(B, tb)
    rows_last_valid = B - (num_tiles - 1) * tb
    mask_last = (B % tb) != 0

    kernel = functools.partial(
        _bce_partial_kernel,
        c1=1.0 - eps / float(num_classes),
        c2=1.0 - eps,
        rows_last_valid=int(rows_last_valid),
        mask_last=bool(mask_last),
    )

    partials = pl.pallas_call(
        kernel,
        out_shape=jax.ShapeDtypeStruct((num_tiles, K), jnp.float32),
        grid=(num_tiles,),
        in_specs=[
            pl.BlockSpec((tb, K), lambda i: (i, 0)),
            pl.BlockSpec((tb, K), lambda i: (i, 0)),
        ],
        out_specs=pl.BlockSpec((1, K), lambda i: (i, 0)),
        compiler_params=pltpu.CompilerParams(
            dimension_semantics=("parallel",),
        ),
    )(inputs, targets)

    # Tiny final reduce (num_tiles x K) + mean over batch.
    return jnp.sum(partials) / jnp.float32(B)


def bce_loss_ref(inputs, targets, *, num_classes, epsilon=0.1, label_smooth=True):
    """Pure-JAX reference mirroring the PyTorch module."""
    eps = epsilon if label_smooth else 0.0
    x = inputs.astype(jnp.float32)
    t = targets.astype(jnp.float32)
    t = (1.0 - eps) * t + eps / num_classes
    max_val = jnp.maximum(-x, 0.0)
    loss = x - x * t + max_val + jnp.log(jnp.exp(-max_val) + jnp.exp(-x - max_val))
    return loss.mean(0).sum()


if __name__ == "__main__":
    key = jax.random.PRNGKey(0)
    k1, k2, k3, k4, k5, k6 = jax.random.split(key, 6)

    # Case 1: small shape matching the module's expected layout (single tile).
    num_classes = 16
    batch = 8
    inputs = jax.random.normal(k1, (batch, num_classes), dtype=jnp.float32)
    targets = (jax.random.uniform(k2, (batch, num_classes)) > 0.5).astype(jnp.float32)

    out = bce_loss(inputs, targets, num_classes=num_classes, epsilon=0.1,
                   label_smooth=True)
    out = jax.block_until_ready(out)
    ref = bce_loss_ref(inputs, targets, num_classes=num_classes, epsilon=0.1,
                       label_smooth=True)
    assert jnp.allclose(out, ref, rtol=1e-5, atol=1e-4), (out, ref)

    # Case 2: ragged batch with a small block_rows to exercise the multi-tile
    # grid, the pl.when-gated trailing-row mask, and the parallel partial sums.
    num_classes2 = 751
    batch2 = 37
    inputs2 = jax.random.normal(k3, (batch2, num_classes2), dtype=jnp.float32)
    targets2 = (jax.random.uniform(k4, (batch2, num_classes2)) > 0.5).astype(jnp.float32)

    out2 = bce_loss(inputs2, targets2, num_classes=num_classes2, epsilon=0.1,
                    label_smooth=True, block_rows=16)
    out2 = jax.block_until_ready(out2)
    ref2 = bce_loss_ref(inputs2, targets2, num_classes=num_classes2, epsilon=0.1,
                        label_smooth=True)
    assert jnp.allclose(out2, ref2, rtol=1e-5, atol=1e-4), (out2, ref2)

    # Case 3: bf16 logits (half the HBM bytes on one stream) + label_smooth=False.
    num_classes3 = 100
    batch3 = 24
    inputs3 = jax.random.normal(k5, (batch3, num_classes3), dtype=jnp.bfloat16)
    targets3 = (jax.random.uniform(k6, (batch3, num_classes3)) > 0.5).astype(jnp.float32)

    out3 = bce_loss(inputs3, targets3, num_classes=num_classes3, epsilon=0.1,
                    label_smooth=False)
    out3 = jax.block_until_ready(out3)
    ref3 = bce_loss_ref(inputs3, targets3, num_classes=num_classes3, epsilon=0.1,
                        label_smooth=False)
    assert jnp.allclose(out3, ref3, rtol=1e-5, atol=1e-3), (out3, ref3)

    print("KERNEL_OK")
</pallas_src>

<mosaic_0001>
module attributes {stable_mosaic.version = 11 : i64} {
  func.func @_bce_partial_kernel(%arg0: i32, %arg1: memref<8x16xf32, #tpu.memory_space<vmem>>, %arg2: memref<8x16xf32, #tpu.memory_space<vmem>>, %arg3: memref<1x16xf32, #tpu.memory_space<vmem>>) attributes {dimension_semantics = [#tpu.dimension_semantics<parallel>], iteration_bounds = array<i64: 1>, scalar_prefetch = 0 : i64, scratch_operands = 0 : i64, tpu.core_type = #tpu.core_type<tc>, window_params = [{transform_indices = @transform_0, window_bounds = array<i64: 8, 16>}, {transform_indices = @transform_1, window_bounds = array<i64: 8, 16>}, {transform_indices = @transform_2, window_bounds = array<i64: 1, 16>}]} {
    %c0 = arith.constant 0 : index
    %c0_0 = arith.constant 0 : index
    %0 = vector.load %arg1[%c0, %c0_0] : memref<8x16xf32, #tpu.memory_space<vmem>>, vector<8x16xf32>
    %c0_1 = arith.constant 0 : index
    %c0_2 = arith.constant 0 : index
    %1 = vector.load %arg2[%c0_1, %c0_2] : memref<8x16xf32, #tpu.memory_space<vmem>>, vector<8x16xf32>
    %cst = arith.constant 0.993749976 : f32
    %2 = vector.broadcast %cst : f32 to vector<8x16xf32>
    %3 = arith.mulf %2, %0 : vector<8x16xf32>
    %4 = arith.mulf %0, %1 : vector<8x16xf32>
    %cst_3 = arith.constant 0.899999976 : f32
    %5 = vector.broadcast %cst_3 : f32 to vector<8x16xf32>
    %6 = arith.mulf %5, %4 : vector<8x16xf32>
    %7 = arith.subf %3, %6 : vector<8x16xf32>
    %cst_4 = arith.constant 0.000000e+00 : f32
    %8 = vector.broadcast %cst_4 : f32 to vector<8x16xf32>
    %9 = arith.subf %8, %0 : vector<8x16xf32>
    %cst_5 = arith.constant 0.000000e+00 : f32
    %10 = vector.broadcast %cst_5 : f32 to vector<8x16xf32>
    %11 = arith.maximumf %9, %10 : vector<8x16xf32>
    %12 = arith.addf %7, %11 : vector<8x16xf32>
    %13 = math.absf %0 : vector<8x16xf32>
    %cst_6 = arith.constant 0.000000e+00 : f32
    %14 = vector.broadcast %cst_6 : f32 to vector<8x16xf32>
    %15 = arith.subf %14, %13 : vector<8x16xf32>
    %16 = math.exp %15 : vector<8x16xf32>
    %cst_7 = arith.constant 1.000000e+00 : f32
    %17 = vector.broadcast %cst_7 : f32 to vector<8x16xf32>
    %18 = arith.addf %17, %16 : vector<8x16xf32>
    %19 = math.log %18 : vector<8x16xf32>
    %20 = arith.addf %12, %19 : vector<8x16xf32>
    %cst_8 = arith.constant dense<0.000000e+00> : vector<16xf32>
    %21 = vector.multi_reduction <add>, %20, %cst_8 [0] : vector<8x16xf32> to vector<16xf32>
    %22 = vector.shape_cast %21 : vector<16xf32> to vector<1x16xf32>
    %c0_9 = arith.constant 0 : index
    %c0_10 = arith.constant 0 : index
    %23 = vector.load %arg3[%c0_9, %c0_10] : memref<1x16xf32, #tpu.memory_space<vmem>>, vector<1x16xf32>
    tpu.vector_store %arg3[%c0_9, %c0_10], %22 {strides = array<i32>} : memref<1x16xf32, #tpu.memory_space<vmem>>, vector<1x16xf32>,
    return
  }
  func.func @transform_0(%arg0: i32) -> (i32, i32) {
    %c0_i32 = arith.constant 0 : i32
    %c0_i32_0 = arith.constant 0 : i32
    return %arg0, %c0_i32 : i32, i32
  }
  func.func @transform_1(%arg0: i32) -> (i32, i32) {
    %c0_i32 = arith.constant 0 : i32
    %c0_i32_0 = arith.constant 0 : i32
    return %arg0, %c0_i32 : i32, i32
  }
  func.func @transform_2(%arg0: i32) -> (i32, i32) {
    %c0_i32 = arith.constant 0 : i32
    %c0_i32_0 = arith.constant 0 : i32
    return %arg0, %c0_i32 : i32, i32
  }
}

</mosaic_0001>

<bundles_post_ra>
// kernel: tpu_custom_call.1
= control target key start
LH: loop header
LB: loop body
LE: loop exit
PB: predicated region body
PF: predicated region fallthrough
CT: control target
= control target key end

     0   :  { %7 = vsyncpa [#allocation3], 0  ;;  %s212_s0 = inlined_call_operand.hbm [shape: f32[8,16], index: 0, kind: input, shape index: {}]   ;;  %s213_s1 = inlined_call_operand.hbm [shape: f32[8,16], index: 1, kind: input, shape index: {}]   ;;  %s214_s2 = inlined_call_operand.hbm [shape: f32[1,16], index: 2, kind: output, shape index: {}]  }
   0x1   :  { %8 = vsyncpa [#allocation6], 0 }
   0x2   :  { %9 = vsyncpa [#allocation4], 0  ;;  %s158_s9 = smov [#allocation2]   ;;  %s159_s11 = smov [#allocation5]  }
   0x3   :  { %s16_s10 = sshll.u32 %s158_s9, 4  ;;  %s26_s12 = sshll.u32 %s159_s11, 4  ;;  %s17_s10 = int_to_ptr.vmem [resolvable:$true] %s16_s10  ;;  %s27_s12 = int_to_ptr.vmem [resolvable:$true] %s26_s12 }
   0x4   :  { %s86_s15 = scalar_lea.hbm %s212_s0, 128 }
   0x5   :  { %p87_p0 = scmp.ne.s32.totalorder %s212_s0, %s86_s15  ;;  %p90_p1 = scmp.lt.u32.totalorder %s86_s15, %s212_s0 }
   0x7   :  { %p92_p2 = pnand %p90_p1, %p87_p0 }
   0x9   :  { %95 = shalt.err (!%p92_p2)
}
   0xa   :  { %s96_s20 = scalar_lea.vmem %s17_s10, 128  ;;  %p101_p4 = scmp.lt.s32.totalorder %s17_s10, %s17_s10 }
   0xb   :  { %p97_p3 = scmp.ne.s32.totalorder %s17_s10, %s96_s20  ;;  %p102_p5 = scmp.lt.s32.totalorder %s96_s20, %s96_s20 }
   0xd   :  { %p103_p6 = por %p102_p5, %p101_p4 }
   0xf   :  { %p104_p7 = pnand %p103_p6, %p97_p3 }
  0x11   :  { %107 = shalt.err (!%p104_p7)
}
  0x12   :  { %19 = dma.hbm_to_vmem [thread:$0]  %s212_s0, 128, %s17_s10, [#allocation3]  }
  0x13   :  { %s108_s25 = scalar_lea.hbm %s213_s1, 128 }
  0x14   :  { %p109_p8 = scmp.ne.s32.totalorder %s213_s1, %s108_s25  ;;  %p112_p9 = scmp.lt.u32.totalorder %s108_s25, %s213_s1 }
  0x16   :  { %p114_p10 = pnand %p112_p9, %p109_p8 }
  0x18   :  { %117 = shalt.err (!%p114_p10)
}
  0x19   :  { %s118_s30 = scalar_lea.vmem %s27_s12, 128  ;;  %p123_p12 = scmp.lt.s32.totalorder %s27_s12, %s27_s12 }
  0x1a   :  { %p119_p11 = scmp.ne.s32.totalorder %s27_s12, %s118_s30  ;;  %p124_p13 = scmp.lt.s32.totalorder %s118_s30, %s118_s30 }
  0x1c   :  { %p125_p0 = por %p124_p13, %p123_p12 }
  0x1e   :  { %p126_p1 = pnand %p125_p0, %p119_p11 }
  0x20   :  { %129 = shalt.err (!%p126_p1)
}
  0x21   :  { %29 = dma.hbm_to_vmem [thread:$0]  %s213_s1, 128, %s27_s12, [#allocation6]  }
  0x22   :  { %152 = dma.done.wait [#allocation3], 128  }
  0x23   :  { %153 = vsyncadd [#allocation3], 4294967168 }
  0x24   :  { %154 = dma.done.wait [#allocation6], 128  }
  0x25   :  { %155 = vsyncadd [#allocation6], 4294967168  ;;  %v36_v0 = vld [vmem:[#allocation2] sm:$0xff]  ;;  %v37_v4 = vld [vmem:[#allocation5] sm:$0xff]  ;;  %vm53_vm0 = vcmask 130048   ;;  %s160_s1 = smov [#allocation7]  }
  0x26   :  { %v45_v1 = vand.u32 2147483647, %v36_v0  ;;  %v39_v6 = vmul.f32 %v37_v4, %v36_v0  ;;  %v38_v8 = vmul.f32 0.99375, %v36_v0  ;;  %v42_v10 = vsub.f32 0.0, %v36_v0  ;;  %s69_s4 = sshll.u32 %s160_s1, 4  ;;  %s70_s4 = int_to_ptr.vmem [resolvable:$true] %s69_s4 }
  0x27   :  { %vm61_vm1 = vcmask 122880   ;;  %s130_s5 = scalar_lea.vmem %s70_s4, 16  ;;  %s134_s6 = scalar_lea.vmem %s70_s4, 32 }
  0x28   :  { %v46_v2 = vsub.f32 0.0, %v45_v1  ;;  %v40_v9 = vmul.f32 0.9, %v39_v6  ;;  %v43_v12 = vmax.f32 %v42_v10, 0.0  ;;  %p131_p2 = scmp.ne.s32.totalorder %s70_s4, %s130_s5  ;;  %p135_p3 = scmp.lt.s32.totalorder %s70_s4, %s70_s4 }
  0x29   :  { %p136_p4 = scmp.lt.s32.totalorder %s134_s6, %s130_s5 }
  0x2a   :  { %v47_v3 = vmul.f32 1.442695, %v46_v2  ;;  %v41_v11 = vsub.f32 %v38_v8, %v40_v9 }
  0x2b   :  { %p137_p5 = por %p136_p4, %p135_p3 }
  0x2c   :  { %82 = vpow2.f32 %v47_v3  ;;  %v44_v13 = vadd.f32 %v43_v12, %v41_v11 }
  0x2d   :  { %p138_p6 = pnand %p137_p5, %p131_p2 }
  0x36   :  { %v83_v5 = vpop.eup %82 }
  0x37   :  { %v49_v7 = vadd.f32 1.0, %v83_v5 }
  0x39   :  { %84 = vlog2.f32 %v49_v7 }
  0x43   :  { %v85_v14 = vpop.eup %84 }
  0x44   :  { %v51_v15 = vmul.f32 0.6931472, %v85_v14 }
  0x46   :  { %v52_v16 = vadd.f32 %v51_v15, %v44_v13 }
  0x48   :  { %v54_v17 = vsel %vm53_vm0, %v52_v16, 0.0 }
  0x49   :  { %v55_v18 = vrot.slane %v54_v17, 4 }
  0x4b   :  { %v56_v19 = vadd.f32 %v55_v18, %v54_v17 }
  0x4d   :  { %v57_v20 = vrot.slane %v56_v19, 2 }
  0x4f   :  { %v58_v21 = vadd.f32 %v57_v20, %v56_v19 }
  0x51   :  { %v59_v22 = vrot.slane %v58_v21, 1 }
  0x53   :  { %v60_v23 = vadd.f32 %v59_v22, %v58_v21 }
  0x55   :  { %62 = vst.msk [vmem:[#allocation7] sm:$0x1] %vm61_vm1, %v60_v23 }
  0x56   :  { %141 = shalt.err (!%p138_p6)
}
  0x57   :  { %s142_s9 = scalar_lea.hbm %s214_s2, 16 }
  0x58   :  { %p143_p7 = scmp.ne.s32.totalorder %s214_s2, %s142_s9  ;;  %p146_p8 = scmp.lt.u32.totalorder %s142_s9, %s214_s2 }
  0x5a   :  { %p148_p9 = pnand %p146_p8, %p143_p7 }
  0x5c   :  { %151 = shalt.err (!%p148_p9)
}
  0x5d   :  { %72 = dma.vmem_to_hbm [thread:$0]  %s70_s4, 16, %s214_s2, [#allocation4]  }
  0x5e   :  { %156 = dma.done.wait [#allocation4], 16  }
  0x5f   :  { %157 = vsyncadd [#allocation4], 4294967280 }
  0x60   :  { %76 = vsyncpa [#allocation3], 1 }
  0x61   :  { %77 = vsyncpa [#allocation6], 1 }
  0x62   :  { %78 = vsyncpa [#allocation4], 1 }

</bundles_post_ra>
